<compile_context>
chip_gen: v6e
topology: v6e:2x2x1
jax: 0.10.0
libtpu: 0.0.40
codegen_flags: <defaults>
</compile_context>

<pallas_src>
import math

import jax
import jax.numpy as jnp
from jax.experimental import pallas as pl
from jax.experimental.pallas import tpu as pltpu

MEAN = 2.4
SCALE = 2.4
CONSTANT = -math.log(SCALE) - math.log(math.sqrt(2.0 * math.pi))
NEG_INV_TWO_SCALE_SQ = -1.0 / (2.0 * SCALE * SCALE)

LANE = 128          # last dim -> 128 lanes (lane-dense, unmasked vst)
BLOCK_R = 8192      # 8192 x 128 x 4B = 4 MiB per f32 block
SMALL_ROWS = 1024   # <= 512 KiB f32: single-block fast path (one DMA in/out)


def _edm_weighting_math(g):
    """f32 elementwise math, shared by kernel body and pure-JAX tail/ref."""
    d = g - MEAN
    data_part = (d * d) * NEG_INV_TWO_SCALE_SQ
    pdf = jnp.exp(CONSTANT + data_part)
    return pdf * (jnp.exp(-g) + 0.25)


def _edm_weighting_kernel(g_ref, o_ref):
    g = g_ref[...].astype(jnp.float32)
    o_ref[...] = _edm_weighting_math(g).astype(o_ref.dtype)


def _round_up(x, m):
    return ((x + m - 1) // m) * m


def _edm_weighting_slab(slab, out_dtype):
    """Run the kernel over a lane-dense (rows, 128) slab."""
    rows = slab.shape[0]
    if rows <= SMALL_ROWS:
        # Genuinely small input: one DMA in, one compute, one DMA out.
        block_r = rows
        grid_len = 1
    else:
        # Force >= 2 grid steps so the megacore split engages on v7x; block
        # rows must be a multiple of 8 when the block doesn't cover the array.
        block_r = min(BLOCK_R, _round_up(pl.cdiv(rows, 2), 8))
        grid_len = pl.cdiv(rows, block_r)  # ragged last block handled by Pallas

    in_spec_kwargs = {}
    if grid_len >= 4:
        # Pure streaming with nothing to hide DMA-issue latency under: a third
        # input buffer shaves step-boundary bubbles on long grids.
        # 3 in + 2 out buffers at 4 MiB each = 20 MiB VMEM, under 32 MiB scoped.
        in_spec_kwargs["pipeline_mode"] = pl.Buffered(3)

    n_elems = rows * LANE
    itemsize = jnp.dtype(out_dtype).itemsize
    cost = pl.CostEstimate(
        flops=6 * n_elems,
        transcendentals=2 * n_elems,
        bytes_accessed=2 * itemsize * n_elems,
    )

    return pl.pallas_call(
        _edm_weighting_kernel,
        out_shape=jax.ShapeDtypeStruct((rows, LANE), out_dtype),
        grid_spec=pltpu.PrefetchScalarGridSpec(
            num_scalar_prefetch=0,
            grid=(grid_len,),
            in_specs=[pl.BlockSpec((block_r, LANE), lambda i: (i, 0),
                                   **in_spec_kwargs)],
            out_specs=pl.BlockSpec((block_r, LANE), lambda i: (i, 0)),
        ),
        compiler_params=pltpu.CompilerParams(
            dimension_semantics=("parallel",),
        ),
        cost_estimate=cost,
    )(slab)


def edm_weighting(gamma: jax.Array) -> jax.Array:
    """Elementwise EDM weighting. Accepts any shape; returns same shape/dtype."""
    orig_shape = gamma.shape
    orig_dtype = gamma.dtype
    n = gamma.size
    if n == 0:
        return gamma

    flat = gamma.reshape(-1)
    rows = n // LANE
    rem = n % LANE

    if rows == 0:
        # Fewer than 128 elements: a kernel launch isn't worth it.
        out = _edm_weighting_math(flat.astype(jnp.float32)).astype(orig_dtype)
        return out.reshape(orig_shape)

    if rem == 0:
        # Common case (e.g. NCHW maps): free reshape to a lane-dense slab.
        slab = flat.reshape(rows, LANE)
        out_flat = _edm_weighting_slab(slab, orig_dtype).reshape(-1)
    else:
        # Ragged tail: kernel over the 128-aligned prefix only; the <128-elem
        # tail is computed in pure JAX. Avoids a full-tensor pad + re-slice
        # (two extra HBM passes on a memory-bound op).
        prefix = flat[: rows * LANE].reshape(rows, LANE)
        out_prefix = _edm_weighting_slab(prefix, orig_dtype).reshape(-1)
        tail = flat[rows * LANE:]
        out_tail = _edm_weighting_math(tail.astype(jnp.float32)).astype(orig_dtype)
        out_flat = jnp.concatenate([out_prefix, out_tail])

    return out_flat.reshape(orig_shape)


def edm_weighting_ref(gamma: jax.Array) -> jax.Array:
    """Pure-JAX reference for correctness checking."""
    g = gamma.astype(jnp.float32)
    data_part = -((g - MEAN) ** 2) / (2.0 * SCALE * SCALE)
    pdf = jnp.exp(CONSTANT + data_part)
    return (pdf * (jnp.exp(-g) + 0.25)).astype(gamma.dtype)


if __name__ == "__main__":
    key = jax.random.PRNGKey(0)

    # gamma of shape (B, C, H, W) = (2, 4, 16, 16), like an NCHW noise-level map.
    gamma = jax.random.normal(key, (2, 4, 16, 16), dtype=jnp.float32) * 3.0
    out = edm_weighting(gamma)
    jax.block_until_ready(out)
    ref = edm_weighting_ref(gamma)
    assert out.shape == gamma.shape and out.dtype == gamma.dtype
    assert jnp.allclose(out, ref, rtol=1e-5, atol=1e-6), "mismatch vs reference"

    # Mid-size input: exercises the forced >=2-grid-step megacore path.
    gamma_mid = jax.random.normal(jax.random.PRNGKey(1), (1, 2, 1024, 128),
                                  dtype=jnp.float32) * 3.0
    out_mid = edm_weighting(gamma_mid)
    jax.block_until_ready(out_mid)
    assert jnp.allclose(out_mid, edm_weighting_ref(gamma_mid),
                        rtol=1e-5, atol=1e-6), "mismatch vs reference (mid)"

    # Large input: exercises BLOCK_R=8192 tiling and the Buffered(3) pipeline.
    gamma_big = jax.random.normal(jax.random.PRNGKey(2), (8, 8, 256, 256),
                                  dtype=jnp.float32) * 3.0
    out_big = edm_weighting(gamma_big)
    jax.block_until_ready(out_big)
    assert jnp.allclose(out_big, edm_weighting_ref(gamma_big),
                        rtol=1e-5, atol=1e-6), "mismatch vs reference (big)"

    # Ragged input (not a multiple of 128): kernel prefix + pure-JAX tail.
    gamma_rag = jax.random.normal(jax.random.PRNGKey(3), (3, 130),
                                  dtype=jnp.float32) * 3.0
    out_rag = edm_weighting(gamma_rag)
    jax.block_until_ready(out_rag)
    assert jnp.allclose(out_rag, edm_weighting_ref(gamma_rag),
                        rtol=1e-5, atol=1e-6), "mismatch vs reference (ragged)"

    print("KERNEL_OK")
</pallas_src>

<mosaic_0001>
module attributes {stable_mosaic.version = 11 : i64} {
  func.func @_edm_weighting_kernel(%arg0: i32, %arg1: memref<16x128xf32, #tpu.memory_space<vmem>>, %arg2: memref<16x128xf32, #tpu.memory_space<vmem>>) attributes {dimension_semantics = [#tpu.dimension_semantics<parallel>], iteration_bounds = array<i64: 1>, scalar_prefetch = 0 : i64, scratch_operands = 0 : i64, tpu.core_type = #tpu.core_type<tc>, window_params = [{transform_indices = @transform_0, window_bounds = array<i64: 16, 128>}, {transform_indices = @transform_1, window_bounds = array<i64: 16, 128>}]} {
    %c0 = arith.constant 0 : index
    %c0_0 = arith.constant 0 : index
    %0 = vector.load %arg1[%c0, %c0_0] : memref<16x128xf32, #tpu.memory_space<vmem>>, vector<16x128xf32>
    %cst = arith.constant 2.400000e+00 : f32
    %1 = vector.broadcast %cst : f32 to vector<16x128xf32>
    %2 = arith.subf %0, %1 : vector<16x128xf32>
    %3 = arith.mulf %2, %2 : vector<16x128xf32>
    %cst_1 = arith.constant -0.0868055522 : f32
    %4 = vector.broadcast %cst_1 : f32 to vector<16x128xf32>
    %5 = arith.mulf %3, %4 : vector<16x128xf32>
    %cst_2 = arith.constant -1.79440725 : f32
    %6 = vector.broadcast %cst_2 : f32 to vector<16x128xf32>
    %7 = arith.addf %6, %5 : vector<16x128xf32>
    %8 = math.exp %7 : vector<16x128xf32>
    %cst_3 = arith.constant 0.000000e+00 : f32
    %9 = vector.broadcast %cst_3 : f32 to vector<16x128xf32>
    %10 = arith.subf %9, %0 : vector<16x128xf32>
    %11 = math.exp %10 : vector<16x128xf32>
    %cst_4 = arith.constant 2.500000e-01 : f32
    %12 = vector.broadcast %cst_4 : f32 to vector<16x128xf32>
    %13 = arith.addf %11, %12 : vector<16x128xf32>
    %14 = arith.mulf %8, %13 : vector<16x128xf32>
    %c0_5 = arith.constant 0 : index
    %c0_6 = arith.constant 0 : index
    %15 = vector.load %arg2[%c0_5, %c0_6] : memref<16x128xf32, #tpu.memory_space<vmem>>, vector<16x128xf32>
    tpu.vector_store %arg2[%c0_5, %c0_6], %14 {strides = array<i32>} : memref<16x128xf32, #tpu.memory_space<vmem>>, vector<16x128xf32>,
    return
  }
  func.func @transform_0(%arg0: i32) -> (i32, i32) {
    %c0_i32 = arith.constant 0 : i32
    %c0_i32_0 = arith.constant 0 : i32
    return %arg0, %c0_i32 : i32, i32
  }
  func.func @transform_1(%arg0: i32) -> (i32, i32) {
    %c0_i32 = arith.constant 0 : i32
    %c0_i32_0 = arith.constant 0 : i32
    return %arg0, %c0_i32 : i32, i32
  }
}

</mosaic_0001>

<bundles_post_ra>
// kernel: tpu_custom_call.1
= control target key start
LH: loop header
LB: loop body
LE: loop exit
PB: predicated region body
PF: predicated region fallthrough
CT: control target
= control target key end

     0   :  { %6 = vsyncpa [#allocation3], 0  ;;  %s150_s0 = inlined_call_operand.hbm [shape: f32[16,128], index: 0, kind: input, shape index: {}]   ;;  %s151_s1 = inlined_call_operand.hbm [shape: f32[16,128], index: 1, kind: output, shape index: {}]  }
   0x1   :  { %7 = vsyncpa [#allocation4], 0  ;;  %s124_s6 = smov [#allocation2]  }
   0x2   :  { %s13_s7 = sshll.u32 %s124_s6, 4  ;;  %s14_s7 = int_to_ptr.vmem [resolvable:$true] %s13_s7 }
   0x3   :  { %s88_s8 = scalar_lea.vmem %s14_s7, 256  ;;  %p93_p1 = scmp.lt.s32.totalorder %s14_s7, %s14_s7 }
   0x4   :  { %p89_p0 = scmp.ne.s32.totalorder %s14_s7, %s88_s8  ;;  %p94_p2 = scmp.lt.s32.totalorder %s88_s8, %s88_s8 }
   0x6   :  { %p95_p3 = por %p94_p2, %p93_p1 }
   0x8   :  { %p96_p4 = pnand %p95_p3, %p89_p0 }
   0xa   :  { %99 = shalt.err (!%p96_p4)
}
   0xb   :  { %s125_s9 = smov 128   ;;  %s126_s10 = smov 8  }
   0xc   :  { %19 = dma.hbm_to_vmem [thread:$0]  %s150_s0, 256, %s14_s7, [#allocation3], %s125_s9, %s125_s9, %s126_s10  }
   0xd   :  { %120 = dma.done.wait [#allocation3], 256  }
   0xe   :  { %121 = vsyncadd [#allocation3], 4294967040  ;;  %v23_v0 = vld [vmem:[#allocation2] sm:$0xff]  ;;  %v24_v1 = vld [vmem:[#allocation2 + $0x8] sm:$0xff]  ;;  %s127_s0 = smov [#allocation5]  }
   0xf   :  { %v66_v2 = vadd.f32 -2.4, %v23_v0  ;;  %v37_v3 = vsub.f32 0.0, %v23_v0  ;;  %v67_v4 = vadd.f32 -2.4, %v24_v1  ;;  %v38_v5 = vsub.f32 0.0, %v24_v1 }
  0x10   :  { %s54_s13 = sshll.u32 %s127_s0, 4  ;;  %s55_s13 = int_to_ptr.vmem [resolvable:$true] %s54_s13 }
  0x11   :  { %v27_v6 = vmul.f32 %v66_v2, %v66_v2  ;;  %v39_v7 = vmul.f32 1.442695, %v37_v3  ;;  %v28_v8 = vmul.f32 %v67_v4, %v67_v4  ;;  %v41_v9 = vmul.f32 1.442695, %v38_v5  ;;  %s100_s14 = scalar_lea.vmem %s55_s13, 256  ;;  %p105_p6 = scmp.lt.s32.totalorder %s55_s13, %s55_s13 }
  0x12   :  { %p101_p5 = scmp.ne.s32.totalorder %s55_s13, %s100_s14  ;;  %p106_p7 = scmp.lt.s32.totalorder %s100_s14, %s100_s14 }
  0x13   :  { %v29_v10 = vmul.f32 -0.08680555, %v27_v6  ;;  %72 = vpow2.f32 %v39_v7  ;;  %v30_v11 = vmul.f32 -0.08680555, %v28_v8 }
  0x14   :  { %74 = vpow2.f32 %v41_v9  ;;  %p107_p8 = por %p106_p7, %p105_p6 }
  0x15   :  { %v31_v12 = vadd.f32 -1.7944072, %v29_v10  ;;  %v32_v13 = vadd.f32 -1.7944072, %v30_v11 }
  0x16   :  { %p108_p9 = pnand %p107_p8, %p101_p5 }
  0x17   :  { %v33_v14 = vmul.f32 1.442695, %v31_v12  ;;  %v35_v15 = vmul.f32 1.442695, %v32_v13 }
  0x19   :  { %76 = vpow2.f32 %v33_v14 }
  0x1a   :  { %78 = vpow2.f32 %v35_v15 }
  0x20   :  { %v73_v16 = vpop.eup %72 }
  0x21   :  { %v75_v17 = vpop.eup %74  ;;  %v43_v18 = vadd.f32 0.25, %v73_v16 }
  0x22   :  { %v44_v19 = vadd.f32 0.25, %v75_v17 }
  0x26   :  { %v77_v20 = vpop.eup %76 }
  0x27   :  { %v79_v21 = vpop.eup %78  ;;  %v45_v22 = vmul.f32 %v77_v20, %v43_v18 }
  0x28   :  { %v46_v23 = vmul.f32 %v79_v21, %v44_v19 }
  0x29   :  { %47 = vst [vmem:[#allocation5] sm:$0xff] %v45_v22 }
  0x2a   :  { %48 = vst [vmem:[#allocation5 + $0x8] sm:$0xff] %v46_v23 }
  0x2b   :  { %111 = shalt.err (!%p108_p9)
}
  0x2c   :  { %60 = dma.vmem_to_hbm [thread:$0]  %s55_s13, 256, %s151_s1, [#allocation4], %s125_s9, %s125_s9, %s126_s10  }
  0x2d   :  { %122 = dma.done.wait [#allocation4], 256  }
  0x2e   :  { %123 = vsyncadd [#allocation4], 4294967040 }
  0x2f   :  { %64 = vsyncpa [#allocation3], 1 }
  0x30   :  { %65 = vsyncpa [#allocation4], 1 }

</bundles_post_ra>
